<compile_context>
chip_gen: v6e
topology: v6e:2x2x1
jax: 0.10.0
libtpu: 0.0.40
codegen_flags: <defaults>
</compile_context>

<pallas_src>
import jax
import jax.numpy as jnp
from jax.experimental import pallas as pl
from jax.experimental.pallas import tpu as pltpu

_EPS = 1e-8
_SUBLANE = 8
_LANE = 128
_VMEM_BUDGET = 20 * 1024 * 1024       # target bytes for pipelined buffers + scratch
_VMEM_LIMIT_BYTES = 32 * 1024 * 1024  # requested scoped VMEM (safe on v5e/v6e/v7x)

_QW_LADDER = (1024, 768, 512, 384, 256, 192, 128, 96, 64, 48, 32, 24, 16, 8)


def _round_up(x, m):
    return -(-x // m) * m


def _qw_tile_candidates(row_cap):
    cands = [t for t in _QW_LADDER if t <= row_cap]
    if row_cap not in cands:
        cands.insert(0, row_cap)
    return cands


def _select_tiles(qw, fsize, way, in_bytes, budget):
    """Pick (tile_qw, tile_k, num_k) so that all double-buffered blocks + scratch
    fit `budget` bytes of VMEM (with (8,128) padding accounted for)."""
    way_rows = _round_up(way, _SUBLANE)
    way_lanes = _round_up(way, _LANE)

    # >= 2 grid steps along QW whenever possible (keeps both v7x TCs busy).
    row_cap = qw if qw < 16 else min(1024, _round_up(-(-qw // 2), _SUBLANE))

    def fixed_bytes(tile_qw):
        rows = _round_up(tile_qw, _SUBLANE)
        out_bufs = 2 * rows * way_lanes * 4                       # f32 output, lane-padded
        scratch = (rows * way_lanes + rows * _LANE + way_rows * _LANE) * 4
        return out_bufs + scratch

    def per_k_bytes(tile_qw):
        rows = _round_up(tile_qw, _SUBLANE)
        return 2 * (rows + way_rows) * in_bytes                   # queries + supports, 2x buffered

    def total_bytes(tile_qw, tile_k):
        return fixed_bytes(tile_qw) + per_k_bytes(tile_qw) * _round_up(tile_k, _LANE)

    cands = _qw_tile_candidates(row_cap)
    min_rows = min(row_cap, 256)

    # 1) Whole feature dim in a single K block, biggest QW tile that fits.
    for t in cands:
        if (t >= min_rows or fsize <= _LANE) and total_bytes(t, fsize) <= budget:
            return t, fsize, 1

    # 2) K-tiled accumulation path (very large fsize / tight budget).
    for t in cands:
        if t > 512:
            continue
        avail = budget - fixed_bytes(t)
        if avail <= 0:
            continue
        tk = (avail // (per_k_bytes(t) * _LANE)) * _LANE
        tk = min(tk, _round_up(fsize, _LANE))
        if tk >= _LANE:
            if tk >= fsize:
                return t, fsize, 1
            return t, tk, -(-fsize // tk)

    # 3) Fallback (only reachable with an absurdly small budget).
    t = cands[-1]
    if fsize <= _LANE:
        return t, fsize, 1
    return t, _LANE, -(-fsize // _LANE)


def _make_cosine_kernel(way, num_k, tile_k, fsize, need_k_mask):
    way_f = float(way)
    eps_sq = _EPS * _EPS
    last_k = num_k - 1

    def cosine_kernel(q_ref, s_ref, o_ref, dots_acc, qss_acc, sss_acc):
        # q_ref: (tile_qw, tile_k) native dtype, s_ref: (way, tile_k) native dtype
        # o_ref: (tile_qw, way) f32, resident across the K axis.
        k = pl.program_id(1)

        @pl.when(k == 0)
        def _init():
            dots_acc[...] = jnp.zeros_like(dots_acc)
            qss_acc[...] = jnp.zeros_like(qss_acc)
            sss_acc[...] = jnp.zeros_like(sss_acc)

        q = q_ref[...]
        s = s_ref[...]

        if need_k_mask:
            # Zero-mask the padded tail of the (partial) last K block so OOB
            # garbage cannot reach the accumulators.
            valid = fsize - k * tile_k
            col = jax.lax.broadcasted_iota(jnp.int32, (1, tile_k), 1)
            keep = col < valid
            q = jnp.where(keep, q, jnp.zeros_like(q))
            s = jnp.where(keep, s, jnp.zeros_like(s))

        # Pairwise dot products on the MXU in the native input dtype,
        # contracting the feature dims directly; f32 accumulation.
        dots_acc[...] += jax.lax.dot_general(
            q, s,
            dimension_numbers=(((1,), (1,)), ((), ())),
            preferred_element_type=jnp.float32,
        )

        # Sum of squares in f32 (VPU mul + lane reduce).
        qf = q.astype(jnp.float32)
        sf = s.astype(jnp.float32)
        qss_acc[...] += jnp.sum(qf * qf, axis=-1, keepdims=True)   # (tile_qw, 1)
        sss_acc[...] += jnp.sum(sf * sf, axis=-1, keepdims=True)   # (way, 1)

        @pl.when(k == last_k)
        def _finalize():
            # rsqrt(clamp(sumsq, eps^2)) == 1 / max(norm, eps); fold `* way` into
            # the small (tile_qw,1) vector.  The (way,1)->(1,way) transpose runs
            # only here (once per output tile), not per K step.
            inv_q = jax.lax.rsqrt(jnp.maximum(qss_acc[...], eps_sq)) * way_f
            inv_s = jax.lax.rsqrt(jnp.maximum(sss_acc[...], eps_sq)).T
            o_ref[...] = (dots_acc[...] * inv_q * inv_s).astype(o_ref.dtype)

    return cosine_kernel


def cosine_similarity_loss(supports, queries, way, shot, query, *,
                           vmem_budget_bytes=_VMEM_BUDGET):
    """Pallas equivalent of CosineSimilarityLoss.forward.

    supports: (way, fsize)        queries: (query*way, fsize)
    returns:  (cosine_similarity (query*way, way) f32, label (query*way,) i32)
    """
    del shot  # unused by the forward pass (kept for API parity)
    fsize = supports.shape[-1]
    qw = query * way

    in_dtype = jnp.promote_types(supports.dtype, queries.dtype)
    supports2d = supports.reshape(way, fsize).astype(in_dtype)
    queries2d = queries.reshape(qw, fsize).astype(in_dtype)
    in_bytes = jnp.dtype(in_dtype).itemsize

    tile_qw, tile_k, num_k = _select_tiles(qw, fsize, way, in_bytes, vmem_budget_bytes)
    num_i = pl.cdiv(qw, tile_qw)
    need_k_mask = (num_k > 1) and (fsize % tile_k != 0)

    # Advisory roofline hint for XLA's scheduler (mem-bound: ~way/2 flop/byte).
    cost = pl.CostEstimate(
        flops=2 * qw * way * fsize + 3 * (qw + way) * fsize,
        transcendentals=qw + way,
        bytes_accessed=(qw + way) * fsize * in_bytes + qw * way * 4,
    )
    vmem_limit = min(max(_VMEM_LIMIT_BYTES, (vmem_budget_bytes * 3) // 2),
                     64 * 1024 * 1024)

    sim = pl.pallas_call(
        _make_cosine_kernel(way, num_k, tile_k, fsize, need_k_mask),
        out_shape=jax.ShapeDtypeStruct((qw, way), jnp.float32),
        grid_spec=pltpu.PrefetchScalarGridSpec(
            num_scalar_prefetch=0,
            grid=(num_i, num_k),
            in_specs=[
                # queries: tiled along QW (parallel) and features (arbitrary).
                pl.BlockSpec((tile_qw, tile_k), lambda i, k: (i, k)),
                # supports: full `way` rows, feature-tiled; lane-dense layout.
                pl.BlockSpec((way, tile_k), lambda i, k: (0, k)),
            ],
            out_specs=pl.BlockSpec((tile_qw, way), lambda i, k: (i, 0)),
            scratch_shapes=[
                pltpu.VMEM((tile_qw, way), jnp.float32),   # dots accumulator
                pltpu.VMEM((tile_qw, 1), jnp.float32),     # query sum-of-squares
                pltpu.VMEM((way, 1), jnp.float32),         # support sum-of-squares
            ],
        ),
        compiler_params=pltpu.CompilerParams(
            dimension_semantics=("parallel", "arbitrary"),
            vmem_limit_bytes=vmem_limit,
        ),
        cost_estimate=cost,
    )(queries2d, supports2d)

    label = jnp.arange(qw, dtype=jnp.int32) // query
    return sim, label


def _reference(supports, queries, way, query):
    fsize = supports.shape[-1]
    s = supports.reshape(way, fsize).astype(jnp.float32)
    q = queries.reshape(query * way, fsize).astype(jnp.float32)
    sn = jnp.maximum(jnp.linalg.norm(s, axis=-1), _EPS)
    qn = jnp.maximum(jnp.linalg.norm(q, axis=-1), _EPS)
    sim = (q @ s.T) / (qn[:, None] * sn[None, :]) * way
    label = jnp.arange(query * way, dtype=jnp.int32) // query
    return sim, label


if __name__ == "__main__":
    key = jax.random.PRNGKey(0)

    def check(way, shot, query, fsize, dtype, atol, rtol, **kw):
        k1, k2 = jax.random.split(jax.random.fold_in(key, fsize))
        supports = jax.random.normal(k1, (way, fsize), dtype=jnp.float32).astype(dtype)
        queries = jax.random.normal(k2, (query * way, fsize), dtype=jnp.float32).astype(dtype)

        sim, label = cosine_similarity_loss(supports, queries, way, shot, query, **kw)
        sim = jax.block_until_ready(sim)
        label = jax.block_until_ready(label)

        ref_sim, ref_label = _reference(supports, queries, way, query)
        assert sim.shape == (query * way, way)
        assert sim.dtype == jnp.float32
        assert label.shape == (query * way,)
        assert jnp.allclose(sim, ref_sim, atol=atol, rtol=rtol), (
            float(jnp.max(jnp.abs(sim - ref_sim))))
        assert jnp.array_equal(label, ref_label)

    # 1) Small f32 case (module-typical shapes): single K block, 2-step QW grid.
    check(way=4, shot=1, query=8, fsize=32, dtype=jnp.float32, atol=1e-5, rtol=1e-5)
    # 2) Forced K-tiling with a partial (masked) last K block via a tiny budget.
    check(way=4, shot=1, query=8, fsize=320, dtype=jnp.float32, atol=1e-4, rtol=1e-4,
          vmem_budget_bytes=100_000)
    # 3) Native bf16 inputs (bf16 MXU path, f32 accumulation).
    check(way=4, shot=1, query=8, fsize=128, dtype=jnp.bfloat16, atol=5e-3, rtol=5e-3)

    print("KERNEL_OK")
</pallas_src>

<mosaic_0001>
module attributes {stable_mosaic.version = 11 : i64} {
  func.func @cosine_kernel(%arg0: i32, %arg1: i32, %arg2: memref<16x32xf32, #tpu.memory_space<vmem>>, %arg3: memref<4x32xf32, #tpu.memory_space<vmem>>, %arg4: memref<16x4xf32, #tpu.memory_space<vmem>>, %arg5: memref<16x4xf32, #tpu.memory_space<vmem>>, %arg6: memref<16x1xf32, #tpu.memory_space<vmem>>, %arg7: memref<4x1xf32, #tpu.memory_space<vmem>>) attributes {dimension_semantics = [#tpu.dimension_semantics<parallel>, #tpu.dimension_semantics<arbitrary>], iteration_bounds = array<i64: 2, 1>, scalar_prefetch = 0 : i64, scratch_operands = 3 : i64, tpu.core_type = #tpu.core_type<tc>, window_params = [{transform_indices = @transform_0, window_bounds = array<i64: 16, 32>}, {transform_indices = @transform_1, window_bounds = array<i64: 4, 32>}, {transform_indices = @transform_2, window_bounds = array<i64: 16, 4>}]} {
    %c0_i32 = arith.constant 0 : i32
    %0 = arith.cmpi eq, %arg1, %c0_i32 : i32
    %1 = arith.extui %0 : i1 to i32
    %c0_i32_0 = arith.constant 0 : i32
    %2 = arith.cmpi ne, %1, %c0_i32_0 : i32
    scf.if %2 {
      %cst_20 = arith.constant 0.000000e+00 : f32
      %24 = vector.broadcast %cst_20 : f32 to vector<16x4xf32>
      %c0_21 = arith.constant 0 : index
      %c0_22 = arith.constant 0 : index
      %25 = vector.load %arg5[%c0_21, %c0_22] : memref<16x4xf32, #tpu.memory_space<vmem>>, vector<16x4xf32>
      tpu.vector_store %arg5[%c0_21, %c0_22], %24 {strides = array<i32>} : memref<16x4xf32, #tpu.memory_space<vmem>>, vector<16x4xf32>,
      %cst_23 = arith.constant 0.000000e+00 : f32
      %26 = vector.broadcast %cst_23 : f32 to vector<16x1xf32>
      %c0_24 = arith.constant 0 : index
      %c0_25 = arith.constant 0 : index
      %27 = vector.load %arg6[%c0_24, %c0_25] : memref<16x1xf32, #tpu.memory_space<vmem>>, vector<16x1xf32>
      tpu.vector_store %arg6[%c0_24, %c0_25], %26 {strides = array<i32>} : memref<16x1xf32, #tpu.memory_space<vmem>>, vector<16x1xf32>,
      %cst_26 = arith.constant 0.000000e+00 : f32
      %28 = vector.broadcast %cst_26 : f32 to vector<4x1xf32>
      %c0_27 = arith.constant 0 : index
      %c0_28 = arith.constant 0 : index
      %29 = vector.load %arg7[%c0_27, %c0_28] : memref<4x1xf32, #tpu.memory_space<vmem>>, vector<4x1xf32>
      tpu.vector_store %arg7[%c0_27, %c0_28], %28 {strides = array<i32>} : memref<4x1xf32, #tpu.memory_space<vmem>>, vector<4x1xf32>,
    } else {
    }
    %c0 = arith.constant 0 : index
    %c0_1 = arith.constant 0 : index
    %3 = vector.load %arg2[%c0, %c0_1] : memref<16x32xf32, #tpu.memory_space<vmem>>, vector<16x32xf32>
    %c0_2 = arith.constant 0 : index
    %c0_3 = arith.constant 0 : index
    %4 = vector.load %arg3[%c0_2, %c0_3] : memref<4x32xf32, #tpu.memory_space<vmem>>, vector<4x32xf32>
    %c0_4 = arith.constant 0 : index
    %c0_5 = arith.constant 0 : index
    %5 = vector.load %arg5[%c0_4, %c0_5] : memref<16x4xf32, #tpu.memory_space<vmem>>, vector<16x4xf32>
    %cst = arith.constant dense<0.000000e+00> : vector<16x4xf32>
    %6 = tpu.matmul %3, %4, %cst {dimension_numbers = #tpu.dot_dimension_numbers<[1], [1], [0], [0], [0, 0, 1, 0], [], []>} : vector<16x32xf32>, vector<4x32xf32>, vector<16x4xf32> -> vector<16x4xf32>
    %7 = arith.addf %5, %6 : vector<16x4xf32>
    %c0_6 = arith.constant 0 : index
    %c0_7 = arith.constant 0 : index
    %8 = vector.load %arg5[%c0_6, %c0_7] : memref<16x4xf32, #tpu.memory_space<vmem>>, vector<16x4xf32>
    tpu.vector_store %arg5[%c0_6, %c0_7], %7 {strides = array<i32>} : memref<16x4xf32, #tpu.memory_space<vmem>>, vector<16x4xf32>,
    %c0_8 = arith.constant 0 : index
    %c0_9 = arith.constant 0 : index
    %9 = vector.load %arg6[%c0_8, %c0_9] : memref<16x1xf32, #tpu.memory_space<vmem>>, vector<16x1xf32>
    %10 = arith.mulf %3, %3 : vector<16x32xf32>
    %cst_10 = arith.constant dense<0.000000e+00> : vector<16xf32>
    %11 = vector.multi_reduction <add>, %10, %cst_10 [1] : vector<16x32xf32> to vector<16xf32>
    %12 = vector.shape_cast %11 : vector<16xf32> to vector<16x1xf32>
    %13 = arith.addf %9, %12 : vector<16x1xf32>
    %c0_11 = arith.constant 0 : index
    %c0_12 = arith.constant 0 : index
    %14 = vector.load %arg6[%c0_11, %c0_12] : memref<16x1xf32, #tpu.memory_space<vmem>>, vector<16x1xf32>
    tpu.vector_store %arg6[%c0_11, %c0_12], %13 {strides = array<i32>} : memref<16x1xf32, #tpu.memory_space<vmem>>, vector<16x1xf32>,
    %c0_13 = arith.constant 0 : index
    %c0_14 = arith.constant 0 : index
    %15 = vector.load %arg7[%c0_13, %c0_14] : memref<4x1xf32, #tpu.memory_space<vmem>>, vector<4x1xf32>
    %16 = arith.mulf %4, %4 : vector<4x32xf32>
    %cst_15 = arith.constant dense<0.000000e+00> : vector<4xf32>
    %17 = vector.multi_reduction <add>, %16, %cst_15 [1] : vector<4x32xf32> to vector<4xf32>
    %18 = vector.shape_cast %17 : vector<4xf32> to vector<4x1xf32>
    %19 = arith.addf %15, %18 : vector<4x1xf32>
    %c0_16 = arith.constant 0 : index
    %c0_17 = arith.constant 0 : index
    %20 = vector.load %arg7[%c0_16, %c0_17] : memref<4x1xf32, #tpu.memory_space<vmem>>, vector<4x1xf32>
    tpu.vector_store %arg7[%c0_16, %c0_17], %19 {strides = array<i32>} : memref<4x1xf32, #tpu.memory_space<vmem>>, vector<4x1xf32>,
    %c0_i32_18 = arith.constant 0 : i32
    %21 = arith.cmpi eq, %arg1, %c0_i32_18 : i32
    %22 = arith.extui %21 : i1 to i32
    %c0_i32_19 = arith.constant 0 : i32
    %23 = arith.cmpi ne, %22, %c0_i32_19 : i32
    scf.if %23 {
      %c0_20 = arith.constant 0 : index
      %c0_21 = arith.constant 0 : index
      %24 = vector.load %arg6[%c0_20, %c0_21] : memref<16x1xf32, #tpu.memory_space<vmem>>, vector<16x1xf32>
      %cst_22 = arith.constant 1.000000e-16 : f32
      %25 = vector.broadcast %cst_22 : f32 to vector<16x1xf32>
      %26 = arith.maximumf %24, %25 : vector<16x1xf32>
      %27 = math.rsqrt %26 : vector<16x1xf32>
      %cst_23 = arith.constant 4.000000e+00 : f32
      %28 = vector.broadcast %cst_23 : f32 to vector<16x1xf32>
      %29 = arith.mulf %27, %28 : vector<16x1xf32>
      %c0_24 = arith.constant 0 : index
      %c0_25 = arith.constant 0 : index
      %30 = vector.load %arg7[%c0_24, %c0_25] : memref<4x1xf32, #tpu.memory_space<vmem>>, vector<4x1xf32>
      %cst_26 = arith.constant 1.000000e-16 : f32
      %31 = vector.broadcast %cst_26 : f32 to vector<4x1xf32>
      %32 = arith.maximumf %30, %31 : vector<4x1xf32>
      %33 = math.rsqrt %32 : vector<4x1xf32>
      %34 = tpu.transpose %33, [1, 0] : vector<4x1xf32> -> vector<1x4xf32>
      %c0_27 = arith.constant 0 : index
      %c0_28 = arith.constant 0 : index
      %35 = vector.load %arg5[%c0_27, %c0_28] : memref<16x4xf32, #tpu.memory_space<vmem>>, vector<16x4xf32>
      %36 = vector.broadcast %29 : vector<16x1xf32> to vector<16x4xf32>
      %37 = arith.mulf %35, %36 : vector<16x4xf32>
      %38 = vector.broadcast %34 : vector<1x4xf32> to vector<16x4xf32>
      %39 = arith.mulf %37, %38 : vector<16x4xf32>
      %c0_29 = arith.constant 0 : index
      %c0_30 = arith.constant 0 : index
      %40 = vector.load %arg4[%c0_29, %c0_30] : memref<16x4xf32, #tpu.memory_space<vmem>>, vector<16x4xf32>
      tpu.vector_store %arg4[%c0_29, %c0_30], %39 {strides = array<i32>} : memref<16x4xf32, #tpu.memory_space<vmem>>, vector<16x4xf32>,
    } else {
    }
    return
  }
  func.func @transform_0(%arg0: i32, %arg1: i32) -> (i32, i32) {
    %c0_i32 = arith.constant 0 : i32
    return %arg0, %arg1 : i32, i32
  }
  func.func @transform_1(%arg0: i32, %arg1: i32) -> (i32, i32) {
    %c0_i32 = arith.constant 0 : i32
    %c0_i32_0 = arith.constant 0 : i32
    return %c0_i32, %arg1 : i32, i32
  }
  func.func @transform_2(%arg0: i32, %arg1: i32) -> (i32, i32) {
    %c0_i32 = arith.constant 0 : i32
    %c0_i32_0 = arith.constant 0 : i32
    return %arg0, %c0_i32 : i32, i32
  }
}

</mosaic_0001>

<bundles_post_ra>
// kernel: tpu_custom_call.1
= control target key start
LH: loop header
LB: loop body
LE: loop exit
PB: predicated region body
PF: predicated region fallthrough
CT: control target
= control target key end

     0   :  { %7 = vsyncpa [#allocation6], 0  ;;  %s856_s0 = inlined_call_operand.hbm [shape: f32[32,32], index: 0, kind: input, shape index: {}]   ;;  %s857_s1 = inlined_call_operand.hbm [shape: f32[4,32], index: 1, kind: input, shape index: {}]   ;;  %s858_s2 = inlined_call_operand.vmem [shape: f32[32,4], index: 2, kind: output, shape index: {}]  }
   0x1   :  { %9 = vsyncpa [#allocation6 + $0x1], 0 }
   0x2   :  { %10 = vsyncpa [#allocation8], 0  ;;  %s726_s9 = smov 0   ;;  %s728_s10 = smov 0  }
   0x3   :  { %s730_s11 = smov 0   ;;  %s732_s12 = smov 0  }
   0x4   :  { %s734_s13 = smov 0   ;;  %s736_s14 = smov 0  }
   0x5 LB: > { %s490_s15 = sadd.s32 4294967295, %s703_s14   ;;  %s37_s16 = sadd.s32 1, %s691_s11  ;;  %s703_s14 = sphi %s736_s14, %s16_s14   ;;  %s699_s13 = sphi %s734_s13, %s872_s13   ;;  %s695_s12 = sphi %s732_s12, %s871_s12   ;;  %s691_s11 = sphi %s730_s11, %s870_s11   ;;  %s687_s10 = sphi %s728_s10, %s869_s10   ;;  %s683_s9 = sphi %s726_s9, %s868_s9  }
   0x6   : > { %p44_p0 = scmp.ne.s32.totalorder %s691_s11, %s687_s10  ;;  %p45_p1 = scmp.eq.s32.totalorder %s703_s14, 0 }
   0x7   : > { %p50_p2 = scmp.ne.s32.totalorder %s687_s10, %s683_s9  ;;  %p760_p3 = scmp.eq.s32.totalorder %s490_s15, 0 }
   0x8   : > { %p46_p4 = por %p45_p1, %p44_p0  ;;  %p492_p5 = scmp.ge.s32.totalorder %s703_s14, 1 }
   0x9   : > { %p767_p6 = por %p760_p3, %p50_p2  ;;  %p113_p7 = scmp.lt.s32.totalorder %s703_s14, 3 }
   0xa   : > { %s705_s20 = smov [#allocation7]   ;;  %p532_p10 = scmp.lt.s32.totalorder %s703_s14, 2 }
   0xb   : > { %s862_s18 = scalar_select %p767_p6, 1, 0 }
   0xc   : > { %p772_p8 = pnand %p492_p5, %p113_p7  ;;  %s128_s21 = sshll.u32 %s705_s20, 4  ;;  %s129_s21 = int_to_ptr.vmem [resolvable:$true] %s128_s21 }
   0xd   : > { %s139_s22 = sand.u32 1, %s691_s11   ;;  %p782_p12 = pnand %p532_p10, %p46_p4 }
   0xe   : > { %s863_s19 = scalar_select %p772_p8, 1, 0 }
   0xf   : > { %p523_p9 = pneg %p772_p8  ;;  %s606_s24 = scalar_lea.vmem %s129_s21, 64 }
  0x10   : > { %p607_p0 = scmp.ne.s32.totalorder %s129_s21, %s606_s24  ;;  %p614_p5 = scmp.lt.s32.totalorder %s129_s21, %s129_s21 }
  0x11   : > { %p524_p11 = pnand %p523_p9, %p760_p3  ;;  %p615_p7 = scmp.lt.s32.totalorder %s606_s24, %s606_s24 }
  0x13   : > { %p597_p13 = pneg %p524_p11  ;;  %p616_p6 = por %p615_p7, %p614_p5 }
  0x15   : > { %p609_p1 = pnand %p607_p0, %p597_p13 }
  0x17   : > { %p610_p2 = pneg %p609_p1 }
  0x19   : > { %p617_p8 = pnand %p616_p6, %p610_p2 }
  0x1b   : > { %620 = shalt.err (!%p617_p8)
}
  0x1c   : > { %526 = dma.hbm_to_vmem [thread:$0]  (!%p524_p11), %s857_s1, 64, %s129_s21, [#allocation8]  }
  0x1d   : > { %s28_s27 = sadd.s32 1, %s699_s13  ;;  %s495_s28 = sshll.u32 %s139_s22, 4 }
  0x1e   : > { %p30_p4 = scmp.ge.s32.totalorder %s28_s27, 2  ;;  %s508_s29 = sshll.u32 %s699_s13, 8 }
  0x1f   : > { %s143_s30 = scalar_lea.vmem [#allocation5], %s495_s28  ;;  %s150_s6 = scalar_lea.hbm %s856_s0, %s508_s29 }
  0x20   : > { %s151_s3 = sshll.u32 %s143_s30, 4  ;;  %s874_s27 = smov (%p30_p4, %s28_s27), 0  ;;  %s152_s3 = int_to_ptr.vmem [resolvable:$true] %s151_s3 }
  0x21   : > { %s32_s7 = ssub.s32 %s699_s13, %s874_s27  ;;  %s140_s9 = scalar_lea.sflag [#allocation6], %s139_s22 }
  0x22   : > { %p798_p6 = scmp.eq.s32.totalorder %s32_s7, 0  ;;  %p623_p8 = pneg %p782_p12 }
  0x23   : > { %s634_s15 = scalar_lea.vmem %s152_s3, 256  ;;  %s706_s20 = smov [#allocation5]  }
  0x24   : > { %p635_p9 = scmp.ne.s32.totalorder %s152_s3, %s634_s15  ;;  %s639_s21 = sshll.u32 %s706_s20, 4  ;;  %s640_s21 = int_to_ptr.vmem [resolvable:$false] %s639_s21 }
  0x25   : > { %s641_s24 = scalar_lea.vmem %s640_s21, 512  ;;  %p642_p13 = scmp.lt.s32.totalorder %s152_s3, %s640_s21 }
  0x26   : > { %p637_p10 = pnand %p635_p9, %p623_p8  ;;  %p643_p0 = scmp.lt.s32.totalorder %s641_s24, %s634_s15 }
  0x28   : > { %p638_p11 = pneg %p637_p10  ;;  %p644_p1 = por %p643_p0, %p642_p13 }
  0x2a   : > { %p645_p2 = pnand %p644_p1, %p638_p11 }
  0x2c   : > { %648 = shalt.err (!%p645_p2)
}
  0x2d   : > { %s707_s25 = smov 128   ;;  %s708_s22 = smov 8  }
  0x2e   : > { %530 = dma.hbm_to_vmem [thread:$0]  (!%p782_p12), %s150_s6, 256, %s152_s3, %s140_s9, %s707_s25, %s707_s25, %s708_s22  }
  0x2f   : > { %s811_s26 = scalar_select %p798_p6, %s691_s11, %s37_s16  }
  0x30   : > { %p866_p5 = scmp.ne.s32.totalorder %s863_s19, 0 }
  0x31   : > { %s165_s28 = sand.u32 (!%p866_p5), 1, %s687_s10   ;;  %p867_p7 = scmp.ne.s32.totalorder (!%p866_p5), %s862_s18, 0 }
  0x32   : > { %163 = sbr.rel (%p866_p5) target bundleno = 399 (0x18f), region = 28  ;;  %s499_s29 = sshll.u32 (!%p866_p5), %s165_s28, 4 }
  0x33   : > { %s166_s30 = scalar_lea.sflag (!%p866_p5), [#allocation6], %s165_s28  ;;  %s169_s4 = scalar_lea.vmem (!%p866_p5), [#allocation5], %s499_s29 }
  0x37   : > { %674 = dma.done.wait (%p867_p7), %s166_s30, 256  }
  0x38   : > { %676 = vsyncadd (%p867_p7), %s166_s30, 4294967040 }
  0x39   : > { %678 = dma.done.wait (%p760_p3), [#allocation8], 64  }
  0x3a   : > { %680 = vsyncadd (%p760_p3), [#allocation8], 4294967232  ;;  %vm208_vm0 = vcmask 7168   ;;  %v709_v0 = vmov 0.0   ;;  %v213_v1 = vld [vmem:[%s169_s4] sm:$0xff]  ;;  %vm218_vm1 = vcmask 261120   ;;  %v392_v37 = vlaneseq }
  0x3b   : > { %209 = vst.msk [vmem:[#allocation3] sm:$0xff] %vm208_vm0, %v709_v0  ;;  %210 = vst.msk [vmem:[#allocation3 + $0x8] sm:$0xff] %vm208_vm0, %v709_v0  ;;  %v214_v2 = vld [vmem:[%s169_s4 + $0x8] sm:$0xff]  ;;  %v215_v3 = vld [vmem:[#allocation7] sm:$0xf]  ;;  %vm325_vm2 = vcmask 257024   ;;  %v310_v4 = vmul.f32 %v213_v1, %v213_v1  ;;  %514 = vmatprep.mubr.msk.f32.mxu0 %vm218_vm1, %v213_v1 }
  0x3c   : > { %v311_v5 = vmul.f32 %v214_v2, %v214_v2  ;;  %v324_v6 = vmul.f32 %v215_v3, %v215_v3  ;;  %512 = vmatprep.subr.msk.mxu0 %vm218_vm1, %v215_v3  ;;  %v710_v10 = vmov 0   ;;  %vm211_vm3 = vcmask 3072   ;;  %s501_s16 = sshll.u32 %s695_s12, 1 }
  0x3d   : > { %513 = vmatpush3.xpose.msk.msra.mxu0 %vm218_vm1, %v215_v3  ;;  %v312_v7 = vsel %vm218_vm1, %v310_v4, 0.0  ;;  %587 = vset.pattern.permute.xlu1 %v710_v10  ;;  %212 = vst.msk [vmem:[#allocation4] sm:$0xf] %vm211_vm3, %v709_v0  ;;  %vm205_vm4 = vcmask 31744   ;;  %p196_p3 = scmp.lt.s32.totalorder %s501_s16, 3  ;;  %v393_v38 = vshrl.u32 %v392_v37, 7 }
  0x3e   : > { %v326_v8 = vsel %vm325_vm2, %v324_v6, 0.0  ;;  %313 = vadd.xlane.f32.xlu0 %v312_v7  ;;  %v315_v9 = vsel %vm218_vm1, %v311_v5, 0.0  ;;  %207 = vst.msk [vmem:[#allocation2 + $0x8] sm:$0xff] %vm205_vm4, %v709_v0  ;;  %206 = vst.msk [vmem:[#allocation2] sm:$0xff] %vm205_vm4, %v709_v0 }
  0x3f   : > { %327 = vadd.xlane.f32.xlu1 %v326_v8  ;;  %588 = vset.pattern.permute.xlu0 %v710_v10  ;;  %s876_s16 = smov (!%p196_p3, %s501_s16), 3  ;;  %v394_v40 = vsub.s32 0, %v393_v38 }
  0x40   : > { %515 = vmatmul.mubr.msk.f32.vlgmr.msra.gmra.mxu0 %vm218_vm1, %v214_v2  ;;  %s502_s17 = sshll.u32 %s876_s16, 3 }
  0x41   : > { %s199_s23 = scalar_lea.vmem %s858_s2, %s502_s17 }
  0x42   : > { %316 = vadd.xlane.f32.xlu0 %v315_v9  ;;  %v308_v11 = vld [vmem:[#allocation3] sm:$0xff]  ;;  %v309_v17 = vld [vmem:[#allocation3 + $0x8] sm:$0xff] }
  0x44   : > { %v323_v12 = vld [vmem:[#allocation4] sm:$0xf] }
  0x45   : > { %v217_v30 = vld [vmem:[#allocation2 + $0x8] sm:$0xff]  ;;  %v216_v32 = vld [vmem:[#allocation2] sm:$0xff] }
  0xc7   : > { %v314_v13 = vpop.xlane.xlu0 %313 }
  0xc8   : > { %v328_v14 = vpop.xlane.xlu1 %327  ;;  %v318_v15 = vadd.f32 %v314_v13, %v308_v11 }
  0xc9   : > { %v329_v16 = vadd.f32 %v328_v14, %v323_v12 }
  0xca   : > { %321 = vst.msk [vmem:[#allocation3] sm:$0xff] %vm208_vm0, %v318_v15 }
  0xcb   : > { %331 = vst.msk [vmem:[#allocation4] sm:$0xf] %vm211_vm3, %v329_v16  ;;  %v317_v18 = vpop.xlane.xlu0 %316 }
  0xcc   : > { %v319_v19 = vadd.f32 %v317_v18, %v309_v17 }
  0xce   : > { %322 = vst.msk [vmem:[#allocation3 + $0x8] sm:$0xff] %vm208_vm0, %v319_v19 }
  0xd1   : > { %v335_v20 = vld [vmem:[#allocation3] sm:$0xff] }
  0xd2   : > { %v337_v21 = vmax.f32 %v335_v20, 1e-16  ;;  %v343_v28 = vld [vmem:[#allocation4] sm:$0xf] }
  0xd3   : > { %v344_v29 = vmax.f32 %v343_v28, 1e-16 }
  0xd4   : > { %589 = vrsqrt.f32 %v337_v21 }
  0xd5   : > { %v336_v22 = vld [vmem:[#allocation3 + $0x8] sm:$0xff] }
  0xd6   : > { %v338_v23 = vmax.f32 %v336_v22, 1e-16 }
  0xd8   : > { %591 = vrsqrt.f32 %v338_v23 }
  0xd9   : > { %593 = vrsqrt.f32 %v344_v29 }
  0xe1   : > { %v590_v24 = vpop.eup %589 }
  0xe2   : > { %v341_v25 = vmul.f32 4.0, %v590_v24 }
  0xe4   : > { %382 = vperm.xlu1 %587, %v341_v25  }
  0xe5   : > { %v592_v26 = vpop.eup %591 }
  0xe6   : > { %v342_v27 = vmul.f32 4.0, %v592_v26  ;;  %v594_v36 = vpop.eup %593 }
  0xe8   : > { %387 = vperm.xlu0 %588, %v342_v27  }
 0x100   : > { %v516_v31 = vpop.f32.mrf.mxu0 }
 0x101   : > { %v304_v33 = vadd.f32 %v516_v31, %v217_v30 }
 0x102   : > { %v294_v34 = vpop.f32.mrf.mxu0 }
 0x103   : > { %307 = vst.msk [vmem:[#allocation2 + $0x8] sm:$0xff] %vm205_vm4, %v304_v33  ;;  %v303_v35 = vadd.f32 %v294_v34, %v216_v32 }
 0x105   : > { %306 = vst.msk [vmem:[#allocation2] sm:$0xff] %vm205_vm4, %v303_v35 }
 0x10a   : > { %v379_v43 = vld [vmem:[#allocation2 + $0x8] sm:$0xff] }
 0x10c   : > { %v378_v41 = vld [vmem:[#allocation2] sm:$0xff] }
 0x10d   : > { %346 = vxpose.xlu1.b32.start.end [1/1] (short) (narrow) %v594_v36, 8 }
 0x15f   : > { %v383_v39 = vpop.permute.xlu1 %382 }
 0x160   : > { %v390_v45 = vmul.f32 %v383_v39, %v378_v41 }
 0x163   : > { %v388_v42 = vpop.permute.xlu0 %387 }
 0x164   : > { %v391_v46 = vmul.f32 %v388_v42, %v379_v43 }
 0x189   : > { %v362_v44 = vpop.trf.xlu1 }
 0x18a   : > { %v395_v47 = vrot.slane %v362_v44, %v394_v40 }
 0x18c   : > { %v396_v48 = vmul.f32 %v395_v47, %v390_v45  ;;  %v397_v49 = vmul.f32 %v395_v47, %v391_v46 }
 0x18e   : > { %398 = vst.msk [vmem:[%s199_s23] sm:$0xff] %vm205_vm4, %v396_v48  ;;  %399 = vst.msk [vmem:[%s199_s23 + $0x8] sm:$0xff] %vm205_vm4, %v397_v49 }
 0x18f PF: > { %s16_s14 = sadd.s32 1, %s703_s14   ;;  %s868_s9 = smov %s687_s10 }
 0x190   : > { %p13_p12 = scmp.ge.s32.totalorder %s16_s14, 4   ;;  %s869_s10 = smov %s691_s11 }
 0x191   : > { %s870_s11 = smov %s811_s26  ;;  %s871_s12 = smov %s699_s13 }
 0x192   : > { %s872_s13 = smov %s874_s27  ;;  %15 = sbr.rel (!%p13_p12) target bundleno = 5 (0x5), region = 81 }
 0x197   :  { %422 = vsyncpa [#allocation6], 1 }
 0x198   :  { %424 = vsyncpa [#allocation6 + $0x1], 1 }
 0x199   :  { %425 = vsyncpa [#allocation8], 1 }

</bundles_post_ra>
